<compile_context>
chip_gen: v7x
topology: tpu7x:2x2x1
jax: 0.10.0
libtpu: 0.0.40
codegen_flags: <defaults>
</compile_context>

<pallas_src>
import math
from functools import partial

import jax
import jax.numpy as jnp
from jax.experimental import pallas as pl
from jax.experimental.pallas import tpu as pltpu


_ROW_ALIGN = 16       # keep row tiles multiples of 16 (bf16 sublane packing)
_ROW_TILE_CAP = 1024  # mem-bound row kernels: big tiles, ~2.7 MiB double-buffered


# --------------------------------- helpers ------------------------------------

def _round_up(x, m):
    return (x + m - 1) // m * m


def _row_tile(m):
    """Row-tile size for (M, H) row-wise kernels. `m` is padded upstream to a
    multiple of 16 (or is tiny). Keep >= 2 grid steps so a 2-TC chip (v7x) can
    split the "parallel" row axis; cap at 1024 rows.
    # TODO(synk): gate the 2-step split on pltpu.get_tpu_info() core count and
    # use pltpu.CORE_PARALLEL if plain "parallel" does not shard across v7x TCs.
    """
    if m <= _ROW_ALIGN:
        return m                              # single full-array block
    tm = min(_ROW_TILE_CAP, m)
    if pl.cdiv(m, tm) < 2:
        tm = max(_ROW_ALIGN, _round_up(m // 2, _ROW_ALIGN))
    return tm


def _pad_rows(x, rows):
    m = x.shape[0]
    return x if m == rows else jnp.pad(x, ((0, rows - m), (0, 0)))


def _gelu_tanh(x):
    # tanh-form GELU (one EUP tanh + a few VPU FMAs); ~1e-3 abs err vs the
    # erf-based nn.GELU() — acceptable for eval-mode inference.
    c = math.sqrt(2.0 / math.pi)
    return 0.5 * x * (1.0 + jnp.tanh(c * (x + 0.044715 * x * x * x)))


# ------------------------------- Pallas kernels -------------------------------

def _linear_mxu_kernel(x_ref, w_ref, b_ref, o_ref):
    # bf16 operands on the MXU, f32 accumulation.
    o_ref[...] = jnp.dot(x_ref[...].astype(jnp.bfloat16), w_ref[...],
                         preferred_element_type=jnp.float32) + b_ref[...]


def _s4_block_kernel(x_ref, u_ref, d_ref, w_ref, b_ref, g_ref, bt_ref, o_ref):
    # Fused position-wise tail of one S4D block on (tm, H) row tiles:
    #   y = u_conv + D*x ; y = GELU(y) ; y = GLU(y @ W_fused + b_fused)
    #   z = y + x ; out = LayerNorm(z) * gamma + beta        (post-norm path)
    x = x_ref[...]                                    # (tm, H) f32 residual in
    u = u_ref[...].astype(jnp.float32)                # (tm, H) bf16 SSM conv out
    h = x.shape[1]

    y = u + x * d_ref[...]                            # D skip (d_ref: (1, H))
    y = _gelu_tanh(y)                                 # f32 VPU + EUP tanh

    proj = jnp.dot(y.astype(jnp.bfloat16), w_ref[...],       # (tm, 2H) f32
                   preferred_element_type=jnp.float32) + b_ref[...]
    y = proj[:, :h] * jax.nn.sigmoid(proj[:, h:])     # GLU

    z = y + x                                         # residual
    # one-pass LayerNorm: the two lane reductions are independent (overlap in XLU)
    inv_h = 1.0 / h
    mean = jnp.sum(z, axis=-1, keepdims=True) * inv_h
    meansq = jnp.sum(z * z, axis=-1, keepdims=True) * inv_h
    var = meansq - mean * mean
    zhat = (z - mean) * jax.lax.rsqrt(var + 1e-5)
    o_ref[...] = zhat * g_ref[...] + bt_ref[...]


# -------------------------------- wrappers ------------------------------------

def linear_mxu(x, w_bf16, b):
    """x: (M, K) f32 @ w: (K, N) bf16 + b: (1, N) f32; K, N lane-dense."""
    M, K = x.shape
    N = w_bf16.shape[1]
    tm = _row_tile(M)
    return pl.pallas_call(
        _linear_mxu_kernel,
        out_shape=jax.ShapeDtypeStruct((M, N), jnp.float32),
        grid=(pl.cdiv(M, tm),),
        in_specs=[pl.BlockSpec((tm, K), lambda i: (i, 0)),
                  pl.BlockSpec((K, N), lambda i: (0, 0)),
                  pl.BlockSpec((1, N), lambda i: (0, 0))],
        out_specs=pl.BlockSpec((tm, N), lambda i: (i, 0)),
        compiler_params=pltpu.CompilerParams(dimension_semantics=("parallel",)),
    )(x, w_bf16, b)


def s4_block(x, u_bf16, D, w_fused_bf16, b_fused, gamma, beta):
    """Fused D-skip + GELU + GLU-proj + residual + LayerNorm on (M, H) rows."""
    M, H = x.shape
    tm = _row_tile(M)
    return pl.pallas_call(
        _s4_block_kernel,
        out_shape=jax.ShapeDtypeStruct((M, H), jnp.float32),
        grid=(pl.cdiv(M, tm),),
        in_specs=[
            pl.BlockSpec((tm, H), lambda i: (i, 0)),      # residual input (f32)
            pl.BlockSpec((tm, H), lambda i: (i, 0)),      # SSM conv output (bf16)
            pl.BlockSpec((1, H), lambda i: (0, 0)),       # D
            pl.BlockSpec((H, 2 * H), lambda i: (0, 0)),   # fused GLU weight (bf16)
            pl.BlockSpec((1, 2 * H), lambda i: (0, 0)),   # fused GLU bias
            pl.BlockSpec((1, H), lambda i: (0, 0)),       # LN gamma
            pl.BlockSpec((1, H), lambda i: (0, 0)),       # LN beta
        ],
        out_specs=pl.BlockSpec((tm, H), lambda i: (i, 0)),
        compiler_params=pltpu.CompilerParams(dimension_semantics=("parallel",)),
    )(x, u_bf16, D, w_fused_bf16, b_fused, gamma, beta)


# ------------------------- parameter-only / XLA glue ---------------------------

def s4d_conv_kernel(lyr, L):
    """S4D SSM convolution kernel K of shape (H, L); input-independent (XLA)."""
    dt = jnp.exp(lyr["log_dt"])                                   # (H,)
    A = -jnp.exp(lyr["log_A_real"]) + 1j * lyr["A_imag"]          # (H, N)
    C = lyr["C_re"] + 1j * lyr["C_im"]                            # (H, N)
    dtA = A * dt[:, None]                                         # (H, N)
    Kpow = jnp.exp(dtA[:, :, None] * jnp.arange(L))               # (H, N, L)
    Cmod = C * (jnp.exp(dtA) - 1.0) / A
    K = 2.0 * jnp.real(jnp.einsum("hn,hnl->hl", Cmod, Kpow))      # (H, L)
    return K.astype(jnp.float32)


def s4d_causal_conv(x, K):
    """Causal depthwise conv of x: (B, L, H) f32 with K: (H, L) via FFT (XLA),
    O(H * L log L). Output returned in bf16 to halve the bytes streamed into
    the HBM-bound fused block (math inside the block is f32).
    # TODO(synk): for very long L a Pallas chunked-recurrence (O(L*H*N)) kernel
    # would cut the three length-2L f32 FFT passes and fuse with the D-skip."""
    B, L, H = x.shape
    n = 2 * L
    xf = jnp.fft.rfft(x, n=n, axis=1)                             # (B, n/2+1, H)
    kf = jnp.fft.rfft(K.T, n=n, axis=0)                           # (n/2+1, H)
    y = jnp.fft.irfft(xf * kf[None], n=n, axis=1)[:, :L, :]
    return y.astype(jnp.bfloat16)


def init_params(key, d_input, d_model, d_output, n_layers, d_state):
    H, N = d_model, d_state // 2
    ks = jax.random.split(key, 3 + n_layers)
    d_out_pad = _round_up(d_output, 128)              # lane-dense decoder output
    dec_w = jax.random.normal(ks[1], (d_model, d_output)) / math.sqrt(d_model)
    params = {
        "encoder_w": (jax.random.normal(ks[0], (d_input, d_model))
                      / math.sqrt(d_input)).astype(jnp.float32),
        "encoder_b": jnp.zeros((1, d_model), jnp.float32),
        # decoder weight/bias pre-padded + pre-cast at init (hoisted out of fwd)
        "decoder_w": jnp.pad(dec_w, ((0, 0), (0, d_out_pad - d_output))
                             ).astype(jnp.bfloat16),
        "decoder_b": jnp.zeros((1, d_out_pad), jnp.float32),
        "layers": [],
    }
    for l in range(n_layers):
        lk = jax.random.split(ks[3 + l], 6)
        w1 = jax.random.normal(lk[4], (H, H)) / math.sqrt(H)      # GLU value
        w2 = jax.random.normal(lk[5], (H, H)) / math.sqrt(H)      # GLU gate
        params["layers"].append({
            "log_dt": (jax.random.uniform(lk[0], (H,))
                       * (math.log(0.1) - math.log(0.001))
                       + math.log(0.001)).astype(jnp.float32),
            "log_A_real": jnp.full((H, N), math.log(0.5), jnp.float32),
            "A_imag": jnp.tile(math.pi * jnp.arange(N, dtype=jnp.float32), (H, 1)),
            "C_re": jax.random.normal(lk[1], (H, N), jnp.float32),
            "C_im": jax.random.normal(lk[2], (H, N), jnp.float32),
            "D": jax.random.normal(lk[3], (1, H), jnp.float32),
            # fused (H, 2H) GLU projection, pre-cast bf16: [:, :H]=value, [:, H:]=gate
            "w_out": jnp.concatenate([w1, w2], axis=1).astype(jnp.bfloat16),
            "b_out": jnp.zeros((1, 2 * H), jnp.float32),
            "ln_gamma": jnp.ones((1, H), jnp.float32),
            "ln_beta": jnp.zeros((1, H), jnp.float32),
        })
    return params


# --------------------------------- forward -----------------------------------

def s4_model_forward(params, x, d_output):
    """x: (B, L, d_input) -> (B, L, d_output). Dropouts are identity (eval)."""
    B, L, d_in = x.shape
    H = params["encoder_w"].shape[1]
    M = B * L
    M_pad = _round_up(M, _ROW_ALIGN)    # keep Pallas row tiling well-defined

    # encoder: tiny-K (= d_input) projection as a plain XLA einsum (lane-sparse
    # in Pallas; XLA fuses it into the layer-1 FFT input prep).
    h = x.reshape(M, d_in) @ params["encoder_w"] + params["encoder_b"]   # (M, H)

    for lyr in params["layers"]:
        K = s4d_conv_kernel(lyr, L)                    # (H, L), parameter-only
        u = s4d_causal_conv(h.reshape(B, L, H), K)     # (B, L, H) bf16
        h = s4_block(_pad_rows(h, M_pad),
                     _pad_rows(u.reshape(M, H), M_pad),
                     lyr["D"], lyr["w_out"], lyr["b_out"],
                     lyr["ln_gamma"], lyr["ln_beta"])[:M]   # (M, H) f32

    # decoder: lane-dense padded matmul; slice back outside Pallas
    y = linear_mxu(_pad_rows(h, M_pad),
                   params["decoder_w"], params["decoder_b"])[:M, :d_output]
    return y.reshape(B, L, d_output)


if __name__ == "__main__":
    B, L = 2, 16
    d_input, d_model, d_output, n_layers, d_state = 4, 128, 10, 4, 16

    key = jax.random.PRNGKey(0)
    pkey, xkey = jax.random.split(key)
    params = init_params(pkey, d_input, d_model, d_output, n_layers, d_state)
    x = jax.random.normal(xkey, (B, L, d_input), jnp.float32)

    fwd = jax.jit(partial(s4_model_forward, d_output=d_output))
    out = fwd(params, x)
    jax.block_until_ready(out)
    assert out.shape == (B, L, d_output) and out.dtype == jnp.float32
    print("KERNEL_OK")
</pallas_src>

<mosaic_0001>
module attributes {stable_mosaic.version = 11 : i64} {
  func.func @_s4_block_kernel(%arg0: i32, %arg1: memref<16x128xf32, #tpu.memory_space<vmem>>, %arg2: memref<16x128xbf16, #tpu.memory_space<vmem>>, %arg3: memref<1x128xf32, #tpu.memory_space<vmem>>, %arg4: memref<128x256xbf16, #tpu.memory_space<vmem>>, %arg5: memref<1x256xf32, #tpu.memory_space<vmem>>, %arg6: memref<1x128xf32, #tpu.memory_space<vmem>>, %arg7: memref<1x128xf32, #tpu.memory_space<vmem>>, %arg8: memref<16x128xf32, #tpu.memory_space<vmem>>) attributes {dimension_semantics = [#tpu.dimension_semantics<parallel>], iteration_bounds = array<i64: 2>, scalar_prefetch = 0 : i64, scratch_operands = 0 : i64, tpu.core_type = #tpu.core_type<tc>, window_params = [{transform_indices = @transform_0, window_bounds = array<i64: 16, 128>}, {transform_indices = @transform_1, window_bounds = array<i64: 16, 128>}, {pipeline_mode = #tpu.pipeline_mode<synchronous>, transform_indices = @transform_2, window_bounds = array<i64: 1, 128>}, {pipeline_mode = #tpu.pipeline_mode<synchronous>, transform_indices = @transform_3, window_bounds = array<i64: 128, 256>}, {pipeline_mode = #tpu.pipeline_mode<synchronous>, transform_indices = @transform_4, window_bounds = array<i64: 1, 256>}, {pipeline_mode = #tpu.pipeline_mode<synchronous>, transform_indices = @transform_5, window_bounds = array<i64: 1, 128>}, {pipeline_mode = #tpu.pipeline_mode<synchronous>, transform_indices = @transform_6, window_bounds = array<i64: 1, 128>}, {transform_indices = @transform_7, window_bounds = array<i64: 16, 128>}]} {
    %c0 = arith.constant 0 : index
    %c0_0 = arith.constant 0 : index
    %0 = vector.load %arg1[%c0, %c0_0] : memref<16x128xf32, #tpu.memory_space<vmem>>, vector<16x128xf32>
    %c0_1 = arith.constant 0 : index
    %c0_2 = arith.constant 0 : index
    %1 = vector.load %arg2[%c0_1, %c0_2] : memref<16x128xbf16, #tpu.memory_space<vmem>>, vector<16x128xbf16>
    %2 = arith.extf %1 : vector<16x128xbf16> to vector<16x128xf32>
    %c0_3 = arith.constant 0 : index
    %c0_4 = arith.constant 0 : index
    %3 = vector.load %arg3[%c0_3, %c0_4] : memref<1x128xf32, #tpu.memory_space<vmem>>, vector<1x128xf32>
    %4 = vector.broadcast %3 : vector<1x128xf32> to vector<16x128xf32>
    %5 = arith.mulf %0, %4 : vector<16x128xf32>
    %6 = arith.addf %2, %5 : vector<16x128xf32>
    %cst = arith.constant 5.000000e-01 : f32
    %7 = vector.broadcast %cst : f32 to vector<16x128xf32>
    %8 = arith.mulf %7, %6 : vector<16x128xf32>
    %cst_5 = arith.constant 4.471500e-02 : f32
    %9 = vector.broadcast %cst_5 : f32 to vector<16x128xf32>
    %10 = arith.mulf %9, %6 : vector<16x128xf32>
    %11 = arith.mulf %10, %6 : vector<16x128xf32>
    %12 = arith.mulf %11, %6 : vector<16x128xf32>
    %13 = arith.addf %6, %12 : vector<16x128xf32>
    %cst_6 = arith.constant 0.797884583 : f32
    %14 = vector.broadcast %cst_6 : f32 to vector<16x128xf32>
    %15 = arith.mulf %14, %13 : vector<16x128xf32>
    %16 = math.tanh %15 : vector<16x128xf32>
    %cst_7 = arith.constant 1.000000e+00 : f32
    %17 = vector.broadcast %cst_7 : f32 to vector<16x128xf32>
    %18 = arith.addf %17, %16 : vector<16x128xf32>
    %19 = arith.mulf %8, %18 : vector<16x128xf32>
    %20 = arith.truncf %19 : vector<16x128xf32> to vector<16x128xbf16>
    %c0_8 = arith.constant 0 : index
    %c0_9 = arith.constant 0 : index
    %21 = vector.load %arg4[%c0_8, %c0_9] : memref<128x256xbf16, #tpu.memory_space<vmem>>, vector<128x256xbf16>
    %cst_10 = arith.constant dense<0.000000e+00> : vector<16x256xf32>
    %22 = tpu.matmul %20, %21, %cst_10 {dimension_numbers = #tpu.dot_dimension_numbers<[1], [0], [0], [1], [0, 0, 1, 1], [], []>} : vector<16x128xbf16>, vector<128x256xbf16>, vector<16x256xf32> -> vector<16x256xf32>
    %c0_11 = arith.constant 0 : index
    %c0_12 = arith.constant 0 : index
    %23 = vector.load %arg5[%c0_11, %c0_12] : memref<1x256xf32, #tpu.memory_space<vmem>>, vector<1x256xf32>
    %24 = vector.broadcast %23 : vector<1x256xf32> to vector<16x256xf32>
    %25 = arith.addf %22, %24 : vector<16x256xf32>
    %26 = vector.extract_strided_slice %25 {offsets = [0, 0], sizes = [16, 128], strides = [1, 1]} : vector<16x256xf32> to vector<16x128xf32>
    %27 = vector.extract_strided_slice %25 {offsets = [0, 128], sizes = [16, 128], strides = [1, 1]} : vector<16x256xf32> to vector<16x128xf32>
    %28 = arith.negf %27 : vector<16x128xf32>
    %29 = math.exp %28 : vector<16x128xf32>
    %cst_13 = arith.constant 1.000000e+00 : f32
    %30 = vector.broadcast %cst_13 : f32 to vector<16x128xf32>
    %31 = arith.addf %30, %29 : vector<16x128xf32>
    %32 = arith.divf %30, %31 : vector<16x128xf32>
    %33 = arith.mulf %26, %32 : vector<16x128xf32>
    %34 = arith.addf %33, %0 : vector<16x128xf32>
    %cst_14 = arith.constant dense<0.000000e+00> : vector<16xf32>
    %35 = vector.multi_reduction <add>, %34, %cst_14 [1] : vector<16x128xf32> to vector<16xf32>
    %36 = vector.shape_cast %35 : vector<16xf32> to vector<16x1xf32>
    %cst_15 = arith.constant 7.812500e-03 : f32
    %37 = vector.broadcast %cst_15 : f32 to vector<16x1xf32>
    %38 = arith.mulf %36, %37 : vector<16x1xf32>
    %39 = arith.mulf %34, %34 : vector<16x128xf32>
    %cst_16 = arith.constant dense<0.000000e+00> : vector<16xf32>
    %40 = vector.multi_reduction <add>, %39, %cst_16 [1] : vector<16x128xf32> to vector<16xf32>
    %41 = vector.shape_cast %40 : vector<16xf32> to vector<16x1xf32>
    %cst_17 = arith.constant 7.812500e-03 : f32
    %42 = vector.broadcast %cst_17 : f32 to vector<16x1xf32>
    %43 = arith.mulf %41, %42 : vector<16x1xf32>
    %44 = arith.mulf %38, %38 : vector<16x1xf32>
    %45 = arith.subf %43, %44 : vector<16x1xf32>
    %46 = vector.broadcast %38 : vector<16x1xf32> to vector<16x128xf32>
    %47 = arith.subf %34, %46 : vector<16x128xf32>
    %cst_18 = arith.constant 9.99999974E-6 : f32
    %48 = vector.broadcast %cst_18 : f32 to vector<16x1xf32>
    %49 = arith.addf %45, %48 : vector<16x1xf32>
    %50 = math.rsqrt %49 : vector<16x1xf32>
    %51 = vector.broadcast %50 : vector<16x1xf32> to vector<16x128xf32>
    %52 = arith.mulf %47, %51 : vector<16x128xf32>
    %c0_19 = arith.constant 0 : index
    %c0_20 = arith.constant 0 : index
    %53 = vector.load %arg6[%c0_19, %c0_20] : memref<1x128xf32, #tpu.memory_space<vmem>>, vector<1x128xf32>
    %54 = vector.broadcast %53 : vector<1x128xf32> to vector<16x128xf32>
    %55 = arith.mulf %52, %54 : vector<16x128xf32>
    %c0_21 = arith.constant 0 : index
    %c0_22 = arith.constant 0 : index
    %56 = vector.load %arg7[%c0_21, %c0_22] : memref<1x128xf32, #tpu.memory_space<vmem>>, vector<1x128xf32>
    %57 = vector.broadcast %56 : vector<1x128xf32> to vector<16x128xf32>
    %58 = arith.addf %55, %57 : vector<16x128xf32>
    %c0_23 = arith.constant 0 : index
    %c0_24 = arith.constant 0 : index
    %59 = vector.load %arg8[%c0_23, %c0_24] : memref<16x128xf32, #tpu.memory_space<vmem>>, vector<16x128xf32>
    tpu.vector_store %arg8[%c0_23, %c0_24], %58 {strides = array<i32>} : memref<16x128xf32, #tpu.memory_space<vmem>>, vector<16x128xf32>,
    return
  }
  func.func @transform_0(%arg0: i32) -> (i32, i32) {
    %c0_i32 = arith.constant 0 : i32
    %c0_i32_0 = arith.constant 0 : i32
    return %arg0, %c0_i32 : i32, i32
  }
  func.func @transform_1(%arg0: i32) -> (i32, i32) {
    %c0_i32 = arith.constant 0 : i32
    %c0_i32_0 = arith.constant 0 : i32
    return %arg0, %c0_i32 : i32, i32
  }
  func.func @transform_2(%arg0: i32) -> (i32, i32) {
    %c0_i32 = arith.constant 0 : i32
    %c0_i32_0 = arith.constant 0 : i32
    %c0_i32_1 = arith.constant 0 : i32
    return %c0_i32, %c0_i32_0 : i32, i32
  }
  func.func @transform_3(%arg0: i32) -> (i32, i32) {
    %c0_i32 = arith.constant 0 : i32
    %c0_i32_0 = arith.constant 0 : i32
    %c0_i32_1 = arith.constant 0 : i32
    return %c0_i32, %c0_i32_0 : i32, i32
  }
  func.func @transform_4(%arg0: i32) -> (i32, i32) {
    %c0_i32 = arith.constant 0 : i32
    %c0_i32_0 = arith.constant 0 : i32
    %c0_i32_1 = arith.constant 0 : i32
    return %c0_i32, %c0_i32_0 : i32, i32
  }
  func.func @transform_5(%arg0: i32) -> (i32, i32) {
    %c0_i32 = arith.constant 0 : i32
    %c0_i32_0 = arith.constant 0 : i32
    %c0_i32_1 = arith.constant 0 : i32
    return %c0_i32, %c0_i32_0 : i32, i32
  }
  func.func @transform_6(%arg0: i32) -> (i32, i32) {
    %c0_i32 = arith.constant 0 : i32
    %c0_i32_0 = arith.constant 0 : i32
    %c0_i32_1 = arith.constant 0 : i32
    return %c0_i32, %c0_i32_0 : i32, i32
  }
  func.func @transform_7(%arg0: i32) -> (i32, i32) {
    %c0_i32 = arith.constant 0 : i32
    %c0_i32_0 = arith.constant 0 : i32
    return %arg0, %c0_i32 : i32, i32
  }
}

module attributes {stable_mosaic.version = 11 : i64} {
  func.func @_linear_mxu_kernel(%arg0: i32, %arg1: memref<16x128xf32, #tpu.memory_space<vmem>>, %arg2: memref<128x128xbf16, #tpu.memory_space<vmem>>, %arg3: memref<1x128xf32, #tpu.memory_space<vmem>>, %arg4: memref<16x128xf32, #tpu.memory_space<vmem>>) attributes {dimension_semantics = [#tpu.dimension_semantics<parallel>], iteration_bounds = array<i64: 2>, scalar_prefetch = 0 : i64, scratch_operands = 0 : i64, tpu.core_type = #tpu.core_type<tc>, window_params = [{transform_indices = @transform_0, window_bounds = array<i64: 16, 128>}, {pipeline_mode = #tpu.pipeline_mode<synchronous>, transform_indices = @transform_1, window_bounds = array<i64: 128, 128>}, {pipeline_mode = #tpu.pipeline_mode<synchronous>, transform_indices = @transform_2, window_bounds = array<i64: 1, 128>}, {transform_indices = @transform_3, window_bounds = array<i64: 16, 128>}]} {
    %c0 = arith.constant 0 : index
    %c0_0 = arith.constant 0 : index
    %0 = vector.load %arg1[%c0, %c0_0] : memref<16x128xf32, #tpu.memory_space<vmem>>, vector<16x128xf32>
    %1 = arith.truncf %0 : vector<16x128xf32> to vector<16x128xbf16>
    %c0_1 = arith.constant 0 : index
    %c0_2 = arith.constant 0 : index
    %2 = vector.load %arg2[%c0_1, %c0_2] : memref<128x128xbf16, #tpu.memory_space<vmem>>, vector<128x128xbf16>
    %cst = arith.constant dense<0.000000e+00> : vector<16x128xf32>
    %3 = tpu.matmul %1, %2, %cst {dimension_numbers = #tpu.dot_dimension_numbers<[1], [0], [0], [1], [0, 0, 1, 1], [], []>} : vector<16x128xbf16>, vector<128x128xbf16>, vector<16x128xf32> -> vector<16x128xf32>
    %c0_3 = arith.constant 0 : index
    %c0_4 = arith.constant 0 : index
    %4 = vector.load %arg3[%c0_3, %c0_4] : memref<1x128xf32, #tpu.memory_space<vmem>>, vector<1x128xf32>
    %5 = vector.broadcast %4 : vector<1x128xf32> to vector<16x128xf32>
    %6 = arith.addf %3, %5 : vector<16x128xf32>
    %c0_5 = arith.constant 0 : index
    %c0_6 = arith.constant 0 : index
    %7 = vector.load %arg4[%c0_5, %c0_6] : memref<16x128xf32, #tpu.memory_space<vmem>>, vector<16x128xf32>
    tpu.vector_store %arg4[%c0_5, %c0_6], %6 {strides = array<i32>} : memref<16x128xf32, #tpu.memory_space<vmem>>, vector<16x128xf32>,
    return
  }
  func.func @transform_0(%arg0: i32) -> (i32, i32) {
    %c0_i32 = arith.constant 0 : i32
    %c0_i32_0 = arith.constant 0 : i32
    return %arg0, %c0_i32 : i32, i32
  }
  func.func @transform_1(%arg0: i32) -> (i32, i32) {
    %c0_i32 = arith.constant 0 : i32
    %c0_i32_0 = arith.constant 0 : i32
    %c0_i32_1 = arith.constant 0 : i32
    return %c0_i32, %c0_i32_0 : i32, i32
  }
  func.func @transform_2(%arg0: i32) -> (i32, i32) {
    %c0_i32 = arith.constant 0 : i32
    %c0_i32_0 = arith.constant 0 : i32
    %c0_i32_1 = arith.constant 0 : i32
    return %c0_i32, %c0_i32_0 : i32, i32
  }
  func.func @transform_3(%arg0: i32) -> (i32, i32) {
    %c0_i32 = arith.constant 0 : i32
    %c0_i32_0 = arith.constant 0 : i32
    return %arg0, %c0_i32 : i32, i32
  }
}

</mosaic_0001>

<bundles_post_ra>
// kernel: reverse.8
= control target key start
LH: loop header
LB: loop body
LE: loop exit
PB: predicated region body
PF: predicated region fallthrough
CT: control target
= control target key end

     0   :  { %v56_v3 = vlaneseq  ;;  %v62_v5 = vld [vmem:[#allocation0 + $0x7] ss:$-1 sm:$0xff]  ;;  %v90_v6 = vld [vmem:[#allocation0 + $0x1f] ss:$-1 sm:$0xff]  ;;  %s202_s0 = inlined_call_operand.vmem [shape: f32[2,128,15], index: 0, kind: input, shape index: {}]   ;;  %s203_s1 = inlined_call_operand.vmem [shape: f32[2,128,15], index: 1, kind: output, shape index: {}]  }
   0x1   :  { %v36_v0 = vld [vmem:[%s202_s0] sm:$0xff]  ;;  %v38_v1 = vld [vmem:[%s202_s0 + $0x8] sm:$0xff]  ;;  %v40_v2 = vld [vmem:[%s202_s0 + $0x10] sm:$0xff]  ;;  %v63_v7 = vrot.slane %v62_v5, 1  ;;  %v91_v8 = vrot.slane %v90_v6, 1 }
   0x2   :  { %37 = vst [vmem:[#allocation0 + $0x8] sm:$0xff] %v36_v0  ;;  %39 = vst [vmem:[#allocation0 + $0x10] sm:$0xff] %v38_v1  ;;  %v42_v4 = vld [vmem:[%s202_s0 + $0x18] sm:$0xff]  ;;  %v57_v9 = vshrl.u32 %v56_v3, 7 }
   0x3   :  { %41 = vst [vmem:[#allocation0 + $0x20] sm:$0xff] %v40_v2  ;;  %43 = vst [vmem:[#allocation0 + $0x28] sm:$0xff] %v42_v4 }
   0x4   :  { %64 = vst [vmem:[#allocation1 + $0x8] sm:$0xff] %v63_v7  ;;  %92 = vst [vmem:[#allocation1 + $0x18] sm:$0xff] %v91_v8  ;;  %vm58_vm0 = vcmp.lt.s32.totalorder %v57_v9, 7 }
   0x9   :  { %v49_v10 = vld [vmem:[#allocation0 + $0xf] ss:$-1 sm:$0xff]  ;;  %v54_v11 = vld [vmem:[#allocation0 + $0x17] ss:$-1 sm:$0xff] }
   0xa   :  { %v67_v12 = vld [vmem:[#allocation0 + $0xf] ss:$-1 sm:$0xff]  ;;  %v50_v13 = vrot.slane %v49_v10, 1  ;;  %v55_v14 = vrot.slane %v54_v11, 1  ;;  %v77_v16 = vld [vmem:[#allocation0 + $0x27] ss:$-1 sm:$0xff] }
   0xb   :  { %v68_v15 = vrot.slane %v67_v12, 1  ;;  %v78_v17 = vrot.slane %v77_v16, 1  ;;  %v82_v18 = vld [vmem:[#allocation0 + $0x2f] ss:$-1 sm:$0xff]  ;;  %v95_v19 = vld [vmem:[#allocation0 + $0x27] ss:$-1 sm:$0xff] }
   0xc   :  { %51 = vst [vmem:[#allocation1] sm:$0xff] %v50_v13  ;;  %v83_v20 = vrot.slane %v82_v18, 1  ;;  %v96_v21 = vrot.slane %v95_v19, 1 }
   0xd   :  { %72 = vst.msk [vmem:[#allocation1 + $0x8] sm:$0xff] %vm58_vm0, %v68_v15  ;;  %59 = vst.msk [vmem:[#allocation1] sm:$0xff] %vm58_vm0, %v55_v14 }
   0xe   :  { %79 = vst [vmem:[#allocation1 + $0x10] sm:$0xff] %v78_v17  ;;  %100 = vst.msk [vmem:[#allocation1 + $0x18] sm:$0xff] %vm58_vm0, %v96_v21 }
   0xf   :  { %87 = vst.msk [vmem:[#allocation1 + $0x10] sm:$0xff] %vm58_vm0, %v83_v20 }
  0x14   :  { %v136_v22 = vld [vmem:[#allocation1 + $0x8] sm:$0xff]  ;;  %v134_v23 = vld [vmem:[#allocation1] sm:$0xff] }
  0x15   :  { %137 = vst [vmem:[%s203_s1 + $0x8] sm:$0xff] %v136_v22  ;;  %135 = vst [vmem:[%s203_s1] sm:$0xff] %v134_v23  ;;  %v140_v25 = vld [vmem:[#allocation1 + $0x18] sm:$0xff] }
  0x16   :  { %v138_v24 = vld [vmem:[#allocation1 + $0x10] sm:$0xff]  ;;  %141 = vst [vmem:[%s203_s1 + $0x18] sm:$0xff] %v140_v25 }
  0x17   :  { %139 = vst [vmem:[%s203_s1 + $0x10] sm:$0xff] %v138_v24 }

// kernel: s4_model_forward.9
= control target key start
LH: loop header
LB: loop body
LE: loop exit
PB: predicated region body
PF: predicated region fallthrough
CT: control target
= control target key end

     0   :  { %s445_s12 = smov 0   ;;  %s489_s0 = inlined_call_operand.vmem [shape: f32[32,128], index: 0, kind: input, shape index: {}]   ;;  %s490_s1 = inlined_call_operand.vmem [shape: bf16[128,128], index: 1, kind: input, shape index: {}]   ;;  %s491_s2 = inlined_call_operand.vmem [shape: f32[1,128], index: 2, kind: input, shape index: {}]   ;;  %s492_s3 = inlined_call_operand.vmem [shape: f32[32,128], index: 3, kind: output, shape index: {}]  }
   0x1 LB: > { %s348_s13 = sadd.s32 4294967295, %s421_s12   ;;  %p352_p0 = scmp.ge.s32.totalorder %s421_s12, 1  ;;  %s421_s12 = sphi %s445_s12, %s13_s12  }
   0x2   : > { %p138_p1 = scmp.lt.s32.totalorder %s421_s12, 3 }
   0x4   : > { %p139_p2 = pnand %p352_p0, %p138_p1 }
   0x5   : > { %v407_v0 = vld [vmem:[%s490_s1] sm:$0xff] (!%p139_p2)   ;;  %v423_v1 = vmov (!%p139_p2), 0.0   ;;  %v408_v2 = vld [vmem:[%s490_s1 + $0x8] sm:$0xff] (!%p139_p2)   ;;  %vm424_vm0 = vmmov (!%p139_p2), 0   ;;  %v409_v3 = vld [vmem:[%s490_s1 + $0x10] sm:$0xff] (!%p139_p2)   ;;  %s353_s20 = sshll.u32 (!%p139_p2), %s348_s13, 1 }
   0x6   : > { %142 = sbr.rel (%p139_p2) target bundleno = 255 (0xff), region = 32  ;;  %377 = vmatprep.subr.bf16.mxu0 (!%p139_p2), %v423_v1  ;;  %393 = vmatprep.mubr.msk.bf16.mxu0 (!%p139_p2), %vm424_vm0, %v423_v1  ;;  %v410_v4 = vld [vmem:[%s490_s1 + $0x18] sm:$0xff] (!%p139_p2)   ;;  %p163_p3 = scmp.lt.s32.totalorder (!%p139_p2), %s353_s20, 3  ;;  %v411_v5 = vld [vmem:[%s490_s1 + $0x20] sm:$0xff] (!%p139_p2)   ;;  %v412_v6 = vld [vmem:[%s490_s1 + $0x28] sm:$0xff] (!%p139_p2)  }
   0x7   : > { %378 = vmatpush3.bf16.msra.mxu0 (!%p139_p2), %v407_v0  ;;  %v413_v7 = vld [vmem:[%s490_s1 + $0x30] sm:$0xff] (!%p139_p2)   ;;  %v414_v8 = vld [vmem:[%s490_s1 + $0x38] sm:$0xff] (!%p139_p2)   ;;  %v357_v12 = vld [vmem:[%s491_s2] ss:$0 sm:$0xff] (!%p139_p2) }
   0x8   : > { %379 = vmatprep.subr.bf16.mxu0 (!%p139_p2), %v423_v1 }
   0xb   : > { %380 = vmatpush3.bf16.msra.mxu0 (!%p139_p2), %v408_v2 }
   0xc   : > { %381 = vmatprep.subr.bf16.mxu0 (!%p139_p2), %v423_v1 }
   0xd   : > { %s494_s20 = smov (!%p163_p3, %s353_s20), 3 }
   0xe   : > { %s354_s27 = sshll.u32 %s494_s20, 3 }
   0xf   : > { %382 = vmatpush3.bf16.msra.mxu0 %v409_v3  ;;  %s166_s5 = scalar_lea.vmem %s489_s0, %s354_s27  ;;  %s172_s13 = scalar_lea.vmem %s492_s3, %s354_s27 }
  0x10   : > { %383 = vmatprep.subr.bf16.mxu0 %v423_v1  ;;  %v175_v9 = vld [vmem:[%s166_s5] sm:$0xff]  ;;  %v176_v10 = vld [vmem:[%s166_s5 + $0x8] sm:$0xff] }
  0x11   : > { %v177_v11 = vpack.c.bf16 %v176_v10, %v175_v9 }
  0x13   : > { %384 = vmatpush3.bf16.msra.mxu0 %v410_v4 }
  0x14   : > { %385 = vmatprep.subr.bf16.mxu0 %v423_v1 }
  0x17   : > { %386 = vmatpush3.bf16.msra.mxu0 %v411_v5 }
  0x18   : > { %387 = vmatprep.subr.bf16.mxu0 %v423_v1 }
  0x1b   : > { %388 = vmatpush3.bf16.msra.mxu0 %v412_v6 }
  0x1c   : > { %389 = vmatprep.subr.bf16.mxu0 %v423_v1 }
  0x1f   : > { %390 = vmatpush3.bf16.msra.mxu0 %v413_v7 }
  0x20   : > { %391 = vmatprep.subr.bf16.mxu0 %v423_v1 }
  0x23   : > { %392 = vmatpush3.bf16.msra.mxu0 %v414_v8 }
  0x26   : > { %394 = vmatmul.mubr.bf16.vlgmr.msra.gmra.mrb[0].mxu0 %v177_v11 }
  0xf9   : > { %v283_v13 = vpop.f32.mrb[0].mxu0 }
  0xfa   : > { %v284_v14 = vadd.f32 %v357_v12, %v283_v13  ;;  %v395_v15 = vpop.f32.mrb[1].mxu0 }
  0xfb   : > { %v286_v16 = vpop.f32.mrb[2].mxu0 }
  0xfc   : > { %290 = vst [vmem:[%s172_s13] sm:$0xff] %v284_v14  ;;  %v287_v17 = vadd.f32 %v357_v12, %v286_v16  ;;  %v396_v18 = vpop.f32.mrb[3].mxu0 }
  0xfe   : > { %291 = vst [vmem:[%s172_s13 + $0x8] sm:$0xff] %v287_v17 }
  0xff PF: > { %s13_s12 = sadd.s32 1, %s421_s12  }
 0x100   : > { %p10_p4 = scmp.ge.s32.totalorder %s13_s12, 4  }
 0x102   :  { %12 = sbr.rel (!%p10_p4) target bundleno = 1 (0x1), region = 62 }

// kernel: s4_model_forward.5
= control target key start
LH: loop header
LB: loop body
LE: loop exit
PB: predicated region body
PF: predicated region fallthrough
CT: control target
= control target key end

     0   :  { %s758_s24 = smov 0   ;;  %s854_s0 = inlined_call_operand.vmem [shape: f32[32,128], index: 0, kind: input, shape index: {}]   ;;  %s855_s1 = inlined_call_operand.vmem [shape: bf16[32,128], index: 1, kind: input, shape index: {}]   ;;  %s856_s2 = inlined_call_operand.vmem [shape: f32[1,128], index: 2, kind: input, shape index: {}]   ;;  %s857_s3 = inlined_call_operand.vmem [shape: bf16[128,256], index: 3, kind: input, shape index: {}]   ;;  %s858_s4 = inlined_call_operand.vmem [shape: f32[1,256], index: 4, kind: input, shape index: {}]   ;;  %s859_s5 = inlined_call_operand.vmem [shape: f32[1,128], index: 5, kind: input, shape index: {}]   ;;  %s860_s6 = inlined_call_operand.vmem [shape: f32[1,128], index: 6, kind: input, shape index: {}]   ;;  %s861_s7 = inlined_call_operand.vmem [shape: f32[32,128], index: 7, kind: output, shape index: {}]  }
   0x1 LB: > { %s622_s25 = sadd.s32 4294967295, %s715_s24   ;;  %p626_p0 = scmp.ge.s32.totalorder %s715_s24, 1  ;;  %s715_s24 = sphi %s758_s24, %s17_s24  }
   0x2   : > { %p249_p1 = scmp.lt.s32.totalorder %s715_s24, 3 }
   0x4   : > { %p250_p2 = pnand %p626_p0, %p249_p1 }
   0x5   : > { %v669_v0 = vld [vmem:[%s857_s3 + $0x4] ss:$8 sps:$4 sm:$0xff] (!%p250_p2)   ;;  %s627_s28 = sshll.u32 (!%p250_p2), %s622_s25, 1  ;;  %v671_v1 = vld [vmem:[%s857_s3] ss:$8 sps:$4 sm:$0xff] (!%p250_p2)   ;;  %v717_v2 = vmov (!%p250_p2), 0   ;;  %v359_v46 = vlaneseq (!%p250_p2) }
   0x6   : > { %253 = sbr.rel (%p250_p2) target bundleno = 467 (0x1d3), region = 48  ;;  %481 = vmatprep.mubr.bf16.mxu0 (!%p250_p2), %v717_v2  ;;  %p287_p3 = scmp.lt.s32.totalorder (!%p250_p2), %s627_s28, 3  ;;  %449 = vmatprep.subr.bf16.mxu0 (!%p250_p2), %v669_v0  ;;  %v672_v3 = vld [vmem:[%s857_s3 + $0x14] ss:$8 sps:$4 sm:$0xff] (!%p250_p2)   ;;  %v674_v4 = vld [vmem:[%s857_s3 + $0x10] ss:$8 sps:$4 sm:$0xff] (!%p250_p2)  }
   0x7   : > { %450 = vmatpush1.bf16.msra.mxu0 (!%p250_p2), %v671_v1  ;;  %v675_v5 = vld [vmem:[%s857_s3 + $0x24] ss:$8 sps:$4 sm:$0xff] (!%p250_p2)   ;;  %v677_v6 = vld [vmem:[%s857_s3 + $0x20] ss:$8 sps:$4 sm:$0xff] (!%p250_p2)   ;;  %v678_v7 = vld [vmem:[%s857_s3 + $0x34] ss:$8 sps:$4 sm:$0xff] (!%p250_p2)  }
   0x8   : > { %451 = vmatprep.subr.bf16.mxu0 (!%p250_p2), %v672_v3  ;;  %v680_v8 = vld [vmem:[%s857_s3 + $0x30] ss:$8 sps:$4 sm:$0xff] (!%p250_p2)   ;;  %v633_v12 = vld [vmem:[%s856_s2] ss:$0 sm:$0xff] (!%p250_p2)  ;;  %v681_v13 = vld [vmem:[%s857_s3 + $0x44] ss:$8 sps:$4 sm:$0xff] (!%p250_p2)  }
   0x9   : > { %v683_v20 = vld [vmem:[%s857_s3 + $0x40] ss:$8 sps:$4 sm:$0xff] (!%p250_p2)   ;;  %v684_v21 = vld [vmem:[%s857_s3 + $0x54] ss:$8 sps:$4 sm:$0xff] (!%p250_p2)   ;;  %v686_v26 = vld [vmem:[%s857_s3 + $0x50] ss:$8 sps:$4 sm:$0xff] (!%p250_p2)  }
   0xa   : > { %v687_v27 = vld [vmem:[%s857_s3 + $0x64] ss:$8 sps:$4 sm:$0xff] (!%p250_p2)   ;;  %v689_v32 = vld [vmem:[%s857_s3 + $0x60] ss:$8 sps:$4 sm:$0xff] (!%p250_p2)   ;;  %v690_v33 = vld [vmem:[%s857_s3 + $0x74] ss:$8 sps:$4 sm:$0xff] (!%p250_p2)  }
   0xb   : > { %452 = vmatpush1.bf16.msra.mxu0 (!%p250_p2), %v674_v4  ;;  %v692_v36 = vld [vmem:[%s857_s3 + $0x70] ss:$8 sps:$4 sm:$0xff] (!%p250_p2)   ;;  %v360_v47 = vshrl.u32 (!%p250_p2), %v359_v46, 7  ;;  %v357_v49 = vld [vmem:[%s858_s4] sm:$0x3] (!%p250_p2) }
   0xc   : > { %453 = vmatprep.subr.bf16.mxu0 (!%p250_p2), %v675_v5 }
   0xd   : > { %s863_s28 = smov (!%p287_p3, %s627_s28), 3  ;;  %v365_v48 = vsub.s32 1, %v360_v47  ;;  %v361_v63 = vsub.s32 0, %v360_v47 }
   0xe   : > { %s628_s14 = sshll.u32 %s863_s28, 3  ;;  %s630_s15 = sshll.u32 %s863_s28, 2 }
   0xf   : > { %s290_s20 = scalar_lea.vmem %s854_s0, %s628_s14  ;;  %s296_s26 = scalar_lea.vmem %s855_s1, %s630_s15  ;;  %454 = vmatpush1.bf16.msra.mxu0 %v677_v6  ;;  %v366_v50 = vrot.slane %v357_v49, %v365_v48  ;;  %v362_v0 = vrot.slane %v357_v49, %v361_v63 }
  0x10   : > { %v802_v9 = vld [vmem:[%s290_s20] sm:$0xff]  ;;  %v804_v10 = vld [vmem:[%s290_s20 + $0x8] sm:$0xff]  ;;  %455 = vmatprep.subr.bf16.mxu0 %v678_v7  ;;  %s302_s13 = scalar_lea.vmem %s861_s7, %s628_s14 }
  0x11   : > { %v657_v11 = vld [vmem:[%s296_s26] sm:$0xff]   ;;  %v318_v16 = vmul.f32 %v633_v12, %v802_v9  ;;  %v319_v17 = vmul.f32 %v633_v12, %v804_v10 }
  0x12   : > { %v658_v14 = vunpack.c.l.bf16 %v657_v11  ;;  %v659_v15 = vunpack.c.h.bf16 %v657_v11 }
  0x13   : > { %456 = vmatpush1.bf16.msra.mxu0 %v680_v8 }
  0x14   : > { %v320_v18 = vadd.f32 %v658_v14, %v318_v16  ;;  %v321_v19 = vadd.f32 %v659_v15, %v319_v17  ;;  %457 = vmatprep.subr.bf16.mxu0 %v681_v13 }
  0x16   : > { %v324_v22 = vmul.f32 0.044715, %v320_v18  ;;  %v325_v23 = vmul.f32 0.044715, %v321_v19  ;;  %v322_v37 = vmul.f32 0.5, %v320_v18  ;;  %v323_v39 = vmul.f32 0.5, %v321_v19 }
  0x17   : > { %458 = vmatpush1.bf16.msra.mxu0 %v683_v20 }
  0x18   : > { %v326_v24 = vmul.f32 %v324_v22, %v320_v18  ;;  %v327_v25 = vmul.f32 %v325_v23, %v321_v19  ;;  %459 = vmatprep.subr.bf16.mxu0 %v684_v21 }
  0x1a   : > { %v328_v28 = vmul.f32 %v326_v24, %v320_v18  ;;  %v329_v29 = vmul.f32 %v327_v25, %v321_v19 }
  0x1b   : > { %460 = vmatpush1.bf16.msra.mxu0 %v686_v26 }
  0x1c   : > { %v330_v30 = vadd.f32 %v328_v28, %v320_v18  ;;  %v331_v31 = vadd.f32 %v329_v29, %v321_v19  ;;  %461 = vmatprep.subr.bf16.mxu0 %v687_v27  ;;  %v652_v27 = vld [vmem:[%s859_s5] ss:$0 sm:$0xff] }
  0x1d   : > { %v653_v29 = vld [vmem:[%s860_s6] ss:$0 sm:$0xff] }
  0x1e   : > { %v332_v34 = vmul.f32 0.7978846, %v330_v30  ;;  %v333_v35 = vmul.f32 0.7978846, %v331_v31 }
  0x1f   : > { %462 = vmatpush1.bf16.msra.mxu0 %v689_v32 }
  0x20   : > { %693 = vtanh.f32 %v332_v34  ;;  %463 = vmatprep.subr.bf16.mxu0 %v690_v33 }
  0x21   : > { %695 = vtanh.f32 %v333_v35 }
  0x23   : > { %464 = vmatpush1.bf16.msra.mxu0 %v692_v36 }
  0x2a   : > { %v694_v38 = vpop.eup %693 }
  0x2b   : > { %v696_v40 = vpop.eup %695  ;;  %v336_v41 = vadd.f32 1.0, %v694_v38 }
  0x2c   : > { %v337_v42 = vadd.f32 1.0, %v696_v40 }
  0x2d   : > { %v338_v43 = vmul.f32 %v336_v41, %v322_v37 }
  0x2e   : > { %v339_v44 = vmul.f32 %v337_v42, %v323_v39 }
  0x30   : > { %v340_v45 = vpack.c.bf16 %v339_v44, %v338_v43 }
  0x32   : > { %482 = vmatmul.mubr.bf16.vlgmr.msra.gmra.mrb[0].mxu0 %v340_v45 }
 0x105   : > { %v483_v51 = vpop.f32.mrb[0].mxu0 }
 0x106   : > { %v485_v52 = vpop.f32.mrb[1].mxu0  ;;  %v484_v1 = vadd.f32 %v483_v51, %v362_v0 }
 0x107   : > { %v486_v53 = vadd.f32 %v485_v52, %v366_v50  ;;  %v487_v54 = vpop.f32.mrb[2].mxu0 }
 0x108   : > { %v489_v55 = vpop.f32.mrb[3].mxu0  ;;  %v488_v3 = vadd.f32 %v487_v54, %v362_v0 }
 0x109   : > { %v650_v56 = vmul.f32 -1.442695, %v486_v53  ;;  %v490_v57 = vadd.f32 %v489_v55, %v366_v50 }
 0x10b   : > { %697 = vpow2.f32 %v650_v56  ;;  %v651_v58 = vmul.f32 -1.442695, %v490_v57 }
 0x10d   : > { %699 = vpow2.f32 %v651_v58 }
 0x115   : > { %v698_v59 = vpop.eup %697 }
 0x116   : > { %v498_v60 = vadd.f32 1.0, %v698_v59 }
 0x117   : > { %v700_v61 = vpop.eup %699 }
 0x118   : > { %701 = vrcp.f32 %v498_v60  ;;  %v499_v62 = vadd.f32 1.0, %v700_v61 }
 0x11a   : > { %703 = vrcp.f32 %v499_v62 }
 0x122   : > { %v702_v2 = vpop.eup %701 }
 0x123   : > { %v504_v4 = vmul.f32 %v702_v2, %v484_v1 }
 0x124   : > { %v704_v5 = vpop.eup %703 }
 0x125   : > { %v506_v6 = vadd.f32 %v504_v4, %v802_v9  ;;  %v505_v7 = vmul.f32 %v704_v5, %v488_v3 }
 0x127   : > { %508 = vadd.xlane.f32.xlu0 %v506_v6  ;;  %v514_v8 = vmul.f32 %v506_v6, %v506_v6  ;;  %v507_v11 = vadd.f32 %v505_v7, %v804_v10 }
 0x129   : > { %516 = vadd.xlane.f32.xlu1 %v514_v8  ;;  %v515_v12 = vmul.f32 %v507_v11, %v507_v11 }
 0x12b   : > { %510 = vadd.xlane.f32.xlu0 %v507_v11 }
 0x12d   : > { %518 = vadd.xlane.f32.xlu1 %v515_v12 }
 0x1b4   : > { %v509_v13 = vpop.xlane.xlu0 %508 }
 0x1b5   : > { %v512_v14 = vmul.f32 0.0078125, %v509_v13 }
 0x1b6   : > { %v517_v15 = vpop.xlane.xlu1 %516 }
 0x1b7   : > { %v522_v16 = vmul.f32 %v512_v14, %v512_v14  ;;  %v520_v17 = vmul.f32 0.0078125, %v517_v15  ;;  %v526_v25 = vsub.f32 %v506_v6, %v512_v14 }
 0x1b8   : > { %v511_v18 = vpop.xlane.xlu0 %510 }
 0x1b9   : > { %v524_v19 = vsub.f32 %v520_v17, %v522_v16  ;;  %v513_v20 = vmul.f32 0.0078125, %v511_v18 }
 0x1ba   : > { %v519_v21 = vpop.xlane.xlu1 %518 }
 0x1bb   : > { %v528_v9 = vadd.f32 1e-05, %v524_v19  ;;  %v523_v22 = vmul.f32 %v513_v20, %v513_v20  ;;  %v521_v23 = vmul.f32 0.0078125, %v519_v21  ;;  %v527_v31 = vsub.f32 %v507_v11, %v513_v20 }
 0x1bd   : > { %705 = vrsqrt.f32 %v528_v9  ;;  %v525_v24 = vsub.f32 %v521_v23, %v523_v22 }
 0x1bf   : > { %v529_v10 = vadd.f32 1e-05, %v525_v24 }
 0x1c1   : > { %707 = vrsqrt.f32 %v529_v10 }
 0x1c7   : > { %v706_v26 = vpop.eup %705 }
 0x1c8   : > { %v532_v28 = vmul.f32 %v706_v26, %v526_v25 }
 0x1ca   : > { %v541_v30 = vmul.f32 %v652_v27, %v532_v28 }
 0x1cb   : > { %v708_v32 = vpop.eup %707 }
 0x1cc   : > { %v550_v33 = vadd.f32 %v653_v29, %v541_v30  ;;  %v533_v34 = vmul.f32 %v708_v32, %v527_v31 }
 0x1ce   : > { %552 = vst [vmem:[%s302_s13] sm:$0xff] %v550_v33  ;;  %v542_v35 = vmul.f32 %v652_v27, %v533_v34 }
 0x1d0   : > { %v551_v36 = vadd.f32 %v653_v29, %v542_v35 }
 0x1d2   : > { %553 = vst [vmem:[%s302_s13 + $0x8] sm:$0xff] %v551_v36 }
 0x1d3 PF: > { %s17_s24 = sadd.s32 1, %s715_s24  }
 0x1d4   : > { %p14_p4 = scmp.ge.s32.totalorder %s17_s24, 4  }
 0x1d6   :  { %16 = sbr.rel (!%p14_p4) target bundleno = 1 (0x1), region = 81 }

</bundles_post_ra>
